<compile_context>
chip_gen: v7x
topology: tpu7x:2x2x1
jax: 0.10.0
libtpu: 0.0.40
codegen_flags: <defaults>
</compile_context>

<pallas_src>
import functools

import jax
import jax.numpy as jnp
from jax.experimental import pallas as pl
from jax.experimental.pallas import tpu as pltpu


HIDDEN_DIMS = (384, 192, 96, 48)
LANE = 128


def _round_up(x, m):
    return ((x + m - 1) // m) * m


def _cdiv(a, b):
    return -(-a // b)


def _choose_tile(batch, row_tile):
    """Pick (TB, B_pad): TB multiple of 8, B_pad = TB * n_steps >= batch.

    For padded batches >= 256 rows we force at least 2 grid steps so the
    "parallel" batch axis can be sharded across both v7x TensorCores
    (harmless no-op on single-TC v5e/v6e).
    """
    b8 = _round_up(max(batch, 8), 8)
    row_tile = max(8, _round_up(row_tile, 8))
    if b8 < 256:
        return b8, b8  # single step; tiny batches are launch-latency bound
    n_steps = max(2, _cdiv(b8, row_tile))
    tb = _round_up(_cdiv(b8, n_steps), 8)
    return tb, tb * n_steps


def _dqn_kernel(x_ref, *refs):
    """x_ref: (TB, in_pad) bf16; refs = (w1, b1, ..., w5, b5, out_ref)."""
    out_ref = refs[-1]
    wb = refs[:-1]
    n_layers = len(wb) // 2

    h = x_ref[...]  # bf16, already in the MXU compute dtype
    for li in range(n_layers):
        w_ref, b_ref = wb[2 * li], wb[2 * li + 1]
        # MXU matmul with f32 accumulation; bias add stays in f32.
        acc = jnp.dot(h, w_ref[...],
                      preferred_element_type=jnp.float32) + b_ref[...]
        if li < n_layers - 1:
            # Fused bias+ReLU in f32, single cast back to bf16 for the next MXU.
            h = jnp.maximum(acc, 0.0).astype(w_ref.dtype)
        else:
            # Lane-dense (padded to 128) output block -> unmasked stores.
            out_ref[...] = acc.astype(out_ref.dtype)


def prepare_params(params, compute_dtype=jnp.bfloat16):
    """Pad params to lane multiples and cast once (call once per model).

    params: list of (W, b), W shape (in, out), b shape (1, out).
    Returns (padded_params, output_dim).  Zero padding is numerically exact.
    """
    out_dim = params[-1][0].shape[1]
    padded = []
    for w, b in params:
        kp = _round_up(w.shape[0], LANE)
        np_ = _round_up(w.shape[1], LANE)
        w_p = jnp.zeros((kp, np_), compute_dtype)
        w_p = w_p.at[:w.shape[0], :w.shape[1]].set(w.astype(compute_dtype))
        b_p = jnp.zeros((1, np_), jnp.float32)
        b_p = b_p.at[:, :b.shape[1]].set(b.astype(jnp.float32))
        padded.append((w_p, b_p))
    return tuple(padded), out_dim


@functools.partial(jax.jit, static_argnames=("out_dim", "row_tile", "out_dtype"))
def dqn_forward(state, padded_params, out_dim, *, row_tile=1024,
                out_dtype=jnp.float32):
    """Run the DQN MLP forward pass with a single Pallas kernel call.

    state:         (B, input_dim) float32
    padded_params: output of prepare_params (already padded / bf16)
    Returns (B, out_dim) in out_dtype.
    """
    B, in_dim = state.shape
    compute_dtype = padded_params[0][0].dtype
    in_pad = padded_params[0][0].shape[0]
    out_pad = padded_params[-1][0].shape[1]

    TB, B_pad = _choose_tile(B, row_tile)

    # Only the (small) input is padded/cast per call; weights are pre-padded.
    x_p = jnp.zeros((B_pad, in_pad), compute_dtype)
    x_p = x_p.at[:B, :in_dim].set(state.astype(compute_dtype))

    flat_params = []
    in_specs = [pl.BlockSpec((TB, in_pad), lambda i: (i, 0))]
    for w_p, b_p in padded_params:
        kp, np_ = w_p.shape
        flat_params += [w_p, b_p]
        # Constant index_map -> weights/biases fetched once, VMEM-resident.
        in_specs.append(pl.BlockSpec((kp, np_), lambda i: (0, 0)))
        in_specs.append(pl.BlockSpec((1, np_), lambda i: (0, 0)))

    flops = 2 * B_pad * sum(w.shape[0] * w.shape[1] for (w, _) in padded_params)
    bytes_accessed = (
        sum(w.size * w.dtype.itemsize + b.size * b.dtype.itemsize
            for (w, b) in padded_params)
        + B_pad * in_pad * jnp.dtype(compute_dtype).itemsize
        + B_pad * out_pad * jnp.dtype(out_dtype).itemsize)

    out_full = pl.pallas_call(
        _dqn_kernel,
        out_shape=jax.ShapeDtypeStruct((B_pad, out_pad), out_dtype),
        grid=(B_pad // TB,),
        in_specs=in_specs,
        out_specs=pl.BlockSpec((TB, out_pad), lambda i: (i, 0)),
        compiler_params=pltpu.CompilerParams(
            dimension_semantics=("parallel",)),
        cost_estimate=pl.CostEstimate(
            flops=flops, transcendentals=0, bytes_accessed=bytes_accessed),
    )(x_p, *flat_params)

    return out_full[:B, :out_dim]


def init_params(key, input_dim, output_dim):
    """Deterministic init mirroring nn.Linear's shapes (stored transposed)."""
    dims = (input_dim,) + HIDDEN_DIMS + (output_dim,)
    params = []
    for i in range(len(dims) - 1):
        fan_in, fan_out = dims[i], dims[i + 1]
        key, kw, kb = jax.random.split(key, 3)
        bound = 1.0 / jnp.sqrt(fan_in)
        # PyTorch nn.Linear weight is (out, in); we store (in, out) for x @ W.
        w = jax.random.uniform(kw, (fan_in, fan_out), jnp.float32, -bound, bound)
        b = jax.random.uniform(kb, (1, fan_out), jnp.float32, -bound, bound)
        params.append((w, b))
    return params


def reference_forward(state, params, compute_dtype=jnp.bfloat16):
    """Mirrors the kernel numerics: bf16 MXU inputs, f32 accumulation."""
    h = state.astype(jnp.float32)
    n = len(params)
    for i, (w, b) in enumerate(params):
        h = jnp.dot(h.astype(compute_dtype), w.astype(compute_dtype),
                    preferred_element_type=jnp.float32) + b
        if i < n - 1:
            h = jnp.maximum(h, 0.0)
    return h


def reference_forward_f32(state, params):
    """Pure f32 reference == PyTorch module semantics."""
    h = state
    n = len(params)
    for i, (w, b) in enumerate(params):
        h = h @ w + b
        if i < n - 1:
            h = jnp.maximum(h, 0.0)
    return h


if __name__ == "__main__":
    key = jax.random.PRNGKey(0)
    k_x, k_p = jax.random.split(key)

    batch = 2
    input_dim = 32      # DQN(input_dim=(32,), ...)
    output_dim = 4

    state = jax.random.normal(k_x, (batch, input_dim), jnp.float32)
    params = init_params(k_p, input_dim, output_dim)

    # Pad/cast weights once (not inside the per-call jitted forward).
    padded_params, out_dim = prepare_params(params)
    padded_params = jax.block_until_ready(padded_params)

    out = dqn_forward(state, padded_params, out_dim)
    out = jax.block_until_ready(out)
    assert out.shape == (batch, output_dim)

    # Tight check vs. a reference that uses the same bf16-in / f32-accumulate
    # scheme as the kernel (zero padding is numerically exact).
    ref = reference_forward(state, params)
    assert jnp.allclose(out, ref, atol=2e-3, rtol=2e-3), "mismatch vs bf16 reference"

    # Loose sanity check vs. the pure-f32 PyTorch-equivalent forward.
    ref32 = reference_forward_f32(state, params)
    assert jnp.allclose(out, ref32, atol=5e-2, rtol=5e-2), "mismatch vs f32 reference"

    # Also exercise a larger batch so the multi-step ("parallel") grid path runs.
    big_state = jax.random.normal(k_x, (300, input_dim), jnp.float32)
    big_out = jax.block_until_ready(dqn_forward(big_state, padded_params, out_dim))
    big_ref = reference_forward(big_state, params)
    assert big_out.shape == (300, output_dim)
    assert jnp.allclose(big_out, big_ref, atol=2e-3, rtol=2e-3), "mismatch at B=300"

    print("KERNEL_OK")
</pallas_src>

<mosaic_0001>
module attributes {stable_mosaic.version = 11 : i64} {
  func.func @_dqn_kernel(%arg0: i32, %arg1: memref<8x128xbf16, #tpu.memory_space<vmem>>, %arg2: memref<128x384xbf16, #tpu.memory_space<vmem>>, %arg3: memref<1x384xf32, #tpu.memory_space<vmem>>, %arg4: memref<384x256xbf16, #tpu.memory_space<vmem>>, %arg5: memref<1x256xf32, #tpu.memory_space<vmem>>, %arg6: memref<256x128xbf16, #tpu.memory_space<vmem>>, %arg7: memref<1x128xf32, #tpu.memory_space<vmem>>, %arg8: memref<128x128xbf16, #tpu.memory_space<vmem>>, %arg9: memref<1x128xf32, #tpu.memory_space<vmem>>, %arg10: memref<128x128xbf16, #tpu.memory_space<vmem>>, %arg11: memref<1x128xf32, #tpu.memory_space<vmem>>, %arg12: memref<8x128xf32, #tpu.memory_space<vmem>>) attributes {dimension_semantics = [#tpu.dimension_semantics<parallel>], iteration_bounds = array<i64: 1>, scalar_prefetch = 0 : i64, scratch_operands = 0 : i64, tpu.core_type = #tpu.core_type<tc>, window_params = [{transform_indices = @transform_0, window_bounds = array<i64: 8, 128>}, {pipeline_mode = #tpu.pipeline_mode<synchronous>, transform_indices = @transform_1, window_bounds = array<i64: 128, 384>}, {pipeline_mode = #tpu.pipeline_mode<synchronous>, transform_indices = @transform_2, window_bounds = array<i64: 1, 384>}, {pipeline_mode = #tpu.pipeline_mode<synchronous>, transform_indices = @transform_3, window_bounds = array<i64: 384, 256>}, {pipeline_mode = #tpu.pipeline_mode<synchronous>, transform_indices = @transform_4, window_bounds = array<i64: 1, 256>}, {pipeline_mode = #tpu.pipeline_mode<synchronous>, transform_indices = @transform_5, window_bounds = array<i64: 256, 128>}, {pipeline_mode = #tpu.pipeline_mode<synchronous>, transform_indices = @transform_6, window_bounds = array<i64: 1, 128>}, {pipeline_mode = #tpu.pipeline_mode<synchronous>, transform_indices = @transform_7, window_bounds = array<i64: 128, 128>}, {pipeline_mode = #tpu.pipeline_mode<synchronous>, transform_indices = @transform_8, window_bounds = array<i64: 1, 128>}, {pipeline_mode = #tpu.pipeline_mode<synchronous>, transform_indices = @transform_9, window_bounds = array<i64: 128, 128>}, {pipeline_mode = #tpu.pipeline_mode<synchronous>, transform_indices = @transform_10, window_bounds = array<i64: 1, 128>}, {transform_indices = @transform_11, window_bounds = array<i64: 8, 128>}]} {
    %c0 = arith.constant 0 : index
    %c0_0 = arith.constant 0 : index
    %0 = vector.load %arg1[%c0, %c0_0] : memref<8x128xbf16, #tpu.memory_space<vmem>>, vector<8x128xbf16>
    %c0_1 = arith.constant 0 : index
    %c0_2 = arith.constant 0 : index
    %1 = vector.load %arg2[%c0_1, %c0_2] : memref<128x384xbf16, #tpu.memory_space<vmem>>, vector<128x384xbf16>
    %cst = arith.constant dense<0.000000e+00> : vector<8x384xf32>
    %2 = tpu.matmul %0, %1, %cst {dimension_numbers = #tpu.dot_dimension_numbers<[1], [0], [0], [1], [0, 0, 1, 1], [], []>} : vector<8x128xbf16>, vector<128x384xbf16>, vector<8x384xf32> -> vector<8x384xf32>
    %c0_3 = arith.constant 0 : index
    %c0_4 = arith.constant 0 : index
    %3 = vector.load %arg3[%c0_3, %c0_4] : memref<1x384xf32, #tpu.memory_space<vmem>>, vector<1x384xf32>
    %4 = vector.broadcast %3 : vector<1x384xf32> to vector<8x384xf32>
    %5 = arith.addf %2, %4 : vector<8x384xf32>
    %cst_5 = arith.constant 0.000000e+00 : f32
    %6 = vector.broadcast %cst_5 : f32 to vector<8x384xf32>
    %7 = arith.maximumf %5, %6 : vector<8x384xf32>
    %8 = arith.truncf %7 : vector<8x384xf32> to vector<8x384xbf16>
    %c0_6 = arith.constant 0 : index
    %c0_7 = arith.constant 0 : index
    %9 = vector.load %arg4[%c0_6, %c0_7] : memref<384x256xbf16, #tpu.memory_space<vmem>>, vector<384x256xbf16>
    %cst_8 = arith.constant dense<0.000000e+00> : vector<8x256xf32>
    %10 = tpu.matmul %8, %9, %cst_8 {dimension_numbers = #tpu.dot_dimension_numbers<[1], [0], [0], [1], [0, 0, 1, 1], [], []>} : vector<8x384xbf16>, vector<384x256xbf16>, vector<8x256xf32> -> vector<8x256xf32>
    %c0_9 = arith.constant 0 : index
    %c0_10 = arith.constant 0 : index
    %11 = vector.load %arg5[%c0_9, %c0_10] : memref<1x256xf32, #tpu.memory_space<vmem>>, vector<1x256xf32>
    %12 = vector.broadcast %11 : vector<1x256xf32> to vector<8x256xf32>
    %13 = arith.addf %10, %12 : vector<8x256xf32>
    %cst_11 = arith.constant 0.000000e+00 : f32
    %14 = vector.broadcast %cst_11 : f32 to vector<8x256xf32>
    %15 = arith.maximumf %13, %14 : vector<8x256xf32>
    %16 = arith.truncf %15 : vector<8x256xf32> to vector<8x256xbf16>
    %c0_12 = arith.constant 0 : index
    %c0_13 = arith.constant 0 : index
    %17 = vector.load %arg6[%c0_12, %c0_13] : memref<256x128xbf16, #tpu.memory_space<vmem>>, vector<256x128xbf16>
    %cst_14 = arith.constant dense<0.000000e+00> : vector<8x128xf32>
    %18 = tpu.matmul %16, %17, %cst_14 {dimension_numbers = #tpu.dot_dimension_numbers<[1], [0], [0], [1], [0, 0, 1, 1], [], []>} : vector<8x256xbf16>, vector<256x128xbf16>, vector<8x128xf32> -> vector<8x128xf32>
    %c0_15 = arith.constant 0 : index
    %c0_16 = arith.constant 0 : index
    %19 = vector.load %arg7[%c0_15, %c0_16] : memref<1x128xf32, #tpu.memory_space<vmem>>, vector<1x128xf32>
    %20 = vector.broadcast %19 : vector<1x128xf32> to vector<8x128xf32>
    %21 = arith.addf %18, %20 : vector<8x128xf32>
    %cst_17 = arith.constant 0.000000e+00 : f32
    %22 = vector.broadcast %cst_17 : f32 to vector<8x128xf32>
    %23 = arith.maximumf %21, %22 : vector<8x128xf32>
    %24 = arith.truncf %23 : vector<8x128xf32> to vector<8x128xbf16>
    %c0_18 = arith.constant 0 : index
    %c0_19 = arith.constant 0 : index
    %25 = vector.load %arg8[%c0_18, %c0_19] : memref<128x128xbf16, #tpu.memory_space<vmem>>, vector<128x128xbf16>
    %cst_20 = arith.constant dense<0.000000e+00> : vector<8x128xf32>
    %26 = tpu.matmul %24, %25, %cst_20 {dimension_numbers = #tpu.dot_dimension_numbers<[1], [0], [0], [1], [0, 0, 1, 1], [], []>} : vector<8x128xbf16>, vector<128x128xbf16>, vector<8x128xf32> -> vector<8x128xf32>
    %c0_21 = arith.constant 0 : index
    %c0_22 = arith.constant 0 : index
    %27 = vector.load %arg9[%c0_21, %c0_22] : memref<1x128xf32, #tpu.memory_space<vmem>>, vector<1x128xf32>
    %28 = vector.broadcast %27 : vector<1x128xf32> to vector<8x128xf32>
    %29 = arith.addf %26, %28 : vector<8x128xf32>
    %cst_23 = arith.constant 0.000000e+00 : f32
    %30 = vector.broadcast %cst_23 : f32 to vector<8x128xf32>
    %31 = arith.maximumf %29, %30 : vector<8x128xf32>
    %32 = arith.truncf %31 : vector<8x128xf32> to vector<8x128xbf16>
    %c0_24 = arith.constant 0 : index
    %c0_25 = arith.constant 0 : index
    %33 = vector.load %arg10[%c0_24, %c0_25] : memref<128x128xbf16, #tpu.memory_space<vmem>>, vector<128x128xbf16>
    %cst_26 = arith.constant dense<0.000000e+00> : vector<8x128xf32>
    %34 = tpu.matmul %32, %33, %cst_26 {dimension_numbers = #tpu.dot_dimension_numbers<[1], [0], [0], [1], [0, 0, 1, 1], [], []>} : vector<8x128xbf16>, vector<128x128xbf16>, vector<8x128xf32> -> vector<8x128xf32>
    %c0_27 = arith.constant 0 : index
    %c0_28 = arith.constant 0 : index
    %35 = vector.load %arg11[%c0_27, %c0_28] : memref<1x128xf32, #tpu.memory_space<vmem>>, vector<1x128xf32>
    %36 = vector.broadcast %35 : vector<1x128xf32> to vector<8x128xf32>
    %37 = arith.addf %34, %36 : vector<8x128xf32>
    %c0_29 = arith.constant 0 : index
    %c0_30 = arith.constant 0 : index
    %38 = vector.load %arg12[%c0_29, %c0_30] : memref<8x128xf32, #tpu.memory_space<vmem>>, vector<8x128xf32>
    tpu.vector_store %arg12[%c0_29, %c0_30], %37 {strides = array<i32>} : memref<8x128xf32, #tpu.memory_space<vmem>>, vector<8x128xf32>,
    return
  }
  func.func @transform_0(%arg0: i32) -> (i32, i32) {
    %c0_i32 = arith.constant 0 : i32
    %c0_i32_0 = arith.constant 0 : i32
    return %arg0, %c0_i32 : i32, i32
  }
  func.func @transform_1(%arg0: i32) -> (i32, i32) {
    %c0_i32 = arith.constant 0 : i32
    %c0_i32_0 = arith.constant 0 : i32
    %c0_i32_1 = arith.constant 0 : i32
    return %c0_i32, %c0_i32_0 : i32, i32
  }
  func.func @transform_2(%arg0: i32) -> (i32, i32) {
    %c0_i32 = arith.constant 0 : i32
    %c0_i32_0 = arith.constant 0 : i32
    %c0_i32_1 = arith.constant 0 : i32
    return %c0_i32, %c0_i32_0 : i32, i32
  }
  func.func @transform_3(%arg0: i32) -> (i32, i32) {
    %c0_i32 = arith.constant 0 : i32
    %c0_i32_0 = arith.constant 0 : i32
    %c0_i32_1 = arith.constant 0 : i32
    return %c0_i32, %c0_i32_0 : i32, i32
  }
  func.func @transform_4(%arg0: i32) -> (i32, i32) {
    %c0_i32 = arith.constant 0 : i32
    %c0_i32_0 = arith.constant 0 : i32
    %c0_i32_1 = arith.constant 0 : i32
    return %c0_i32, %c0_i32_0 : i32, i32
  }
  func.func @transform_5(%arg0: i32) -> (i32, i32) {
    %c0_i32 = arith.constant 0 : i32
    %c0_i32_0 = arith.constant 0 : i32
    %c0_i32_1 = arith.constant 0 : i32
    return %c0_i32, %c0_i32_0 : i32, i32
  }
  func.func @transform_6(%arg0: i32) -> (i32, i32) {
    %c0_i32 = arith.constant 0 : i32
    %c0_i32_0 = arith.constant 0 : i32
    %c0_i32_1 = arith.constant 0 : i32
    return %c0_i32, %c0_i32_0 : i32, i32
  }
  func.func @transform_7(%arg0: i32) -> (i32, i32) {
    %c0_i32 = arith.constant 0 : i32
    %c0_i32_0 = arith.constant 0 : i32
    %c0_i32_1 = arith.constant 0 : i32
    return %c0_i32, %c0_i32_0 : i32, i32
  }
  func.func @transform_8(%arg0: i32) -> (i32, i32) {
    %c0_i32 = arith.constant 0 : i32
    %c0_i32_0 = arith.constant 0 : i32
    %c0_i32_1 = arith.constant 0 : i32
    return %c0_i32, %c0_i32_0 : i32, i32
  }
  func.func @transform_9(%arg0: i32) -> (i32, i32) {
    %c0_i32 = arith.constant 0 : i32
    %c0_i32_0 = arith.constant 0 : i32
    %c0_i32_1 = arith.constant 0 : i32
    return %c0_i32, %c0_i32_0 : i32, i32
  }
  func.func @transform_10(%arg0: i32) -> (i32, i32) {
    %c0_i32 = arith.constant 0 : i32
    %c0_i32_0 = arith.constant 0 : i32
    %c0_i32_1 = arith.constant 0 : i32
    return %c0_i32, %c0_i32_0 : i32, i32
  }
  func.func @transform_11(%arg0: i32) -> (i32, i32) {
    %c0_i32 = arith.constant 0 : i32
    %c0_i32_0 = arith.constant 0 : i32
    return %arg0, %c0_i32 : i32, i32
  }
}

</mosaic_0001>

<bundles_post_ra>
// kernel: dqn_forward.1
= control target key start
LH: loop header
LB: loop body
LE: loop exit
PB: predicated region body
PF: predicated region fallthrough
CT: control target
= control target key end

     0   :  { %16 = vsyncpa [#allocation3], 0  ;;  %s1864_s0 = inlined_call_operand.vmem [shape: bf16[8,128], index: 0, kind: input, shape index: {}]   ;;  %s1865_s1 = inlined_call_operand.hbm [shape: bf16[128,384], index: 1, kind: input, shape index: {}]   ;;  %s1866_s2 = inlined_call_operand.vmem [shape: f32[1,384], index: 2, kind: input, shape index: {}]   ;;  %s1867_s3 = inlined_call_operand.hbm [shape: bf16[384,256], index: 3, kind: input, shape index: {}]   ;;  %s1868_s4 = inlined_call_operand.vmem [shape: f32[1,256], index: 4, kind: input, shape index: {}]   ;;  %s1869_s5 = inlined_call_operand.hbm [shape: bf16[256,128], index: 5, kind: input, shape index: {}]   ;;  %s1870_s6 = inlined_call_operand.vmem [shape: f32[1,128], index: 6, kind: input, shape index: {}]   ;;  %s1871_s7 = inlined_call_operand.hbm [shape: bf16[128,128], index: 7, kind: input, shape index: {}]   ;;  %s1872_s8 = inlined_call_operand.vmem [shape: f32[1,128], index: 8, kind: input, shape index: {}]   ;;  %s1873_s9 = inlined_call_operand.hbm [shape: bf16[128,128], index: 9, kind: input, shape index: {}]   ;;  %s1874_s10 = inlined_call_operand.vmem [shape: f32[1,128], index: 10, kind: input, shape index: {}]   ;;  %s1875_s11 = inlined_call_operand.vmem [shape: f32[8,128], index: 11, kind: output, shape index: {}]  }
   0x1   :  { %17 = vsyncpa [#allocation5], 0 }
   0x2   :  { %18 = vsyncpa [#allocation8], 0  ;;  %s1655_s17 = smov [#allocation4]   ;;  %s1539_s21 = scalar_lea.hbm %s1867_s3, 6144 }
   0x3   :  { %s40_s18 = sshll.u32 %s1655_s17, 4  ;;  %p1540_p0 = scmp.ne.s32.totalorder %s1867_s3, %s1539_s21  ;;  %s41_s18 = int_to_ptr.vmem [resolvable:$true] %s40_s18 }
   0x4   :  { %p1543_p1 = scmp.lt.u32.totalorder %s1539_s21, %s1867_s3 }
   0x6   :  { %p1545_p2 = pnand %p1543_p1, %p1540_p0 }
   0x8   :  { %1548 = shalt.err (!%p1545_p2)
}
   0x9   :  { %s1549_s26 = scalar_lea.vmem %s41_s18, 6144  ;;  %p1554_p4 = scmp.lt.s32.totalorder %s41_s18, %s41_s18 }
   0xa   :  { %p1550_p3 = scmp.ne.s32.totalorder %s41_s18, %s1549_s26  ;;  %p1555_p5 = scmp.lt.s32.totalorder %s1549_s26, %s1549_s26 }
   0xc   :  { %p1556_p6 = por %p1555_p5, %p1554_p4 }
   0xe   :  { %p1557_p7 = pnand %p1556_p6, %p1550_p3 }
  0x10   :  { %1560 = shalt.err (!%p1557_p7)
}
  0x11   :  { %s1656_s27 = smov 128   ;;  %s1657_s28 = smov 8  }
  0x12   :  { %46 = dma.hbm_to_vmem [thread:$0]  %s1867_s3, 6144, %s41_s18, [#allocation5], %s1656_s27, %s1656_s27, %s1657_s28  }
  0x13   :  { %s1658_s12 = smov [#allocation7]   ;;  %s1659_s14 = smov [#allocation2]  }
  0x14   :  { %s68_s13 = sshll.u32 %s1658_s12, 4  ;;  %s26_s15 = sshll.u32 %s1659_s14, 4  ;;  %s69_s13 = int_to_ptr.vmem [resolvable:$true] %s68_s13  ;;  %s27_s15 = int_to_ptr.vmem [resolvable:$true] %s26_s15 }
  0x15   :  { %s1561_s19 = scalar_lea.hbm %s1871_s7, 1024 }
  0x16   :  { %p1562_p8 = scmp.ne.s32.totalorder %s1871_s7, %s1561_s19  ;;  %p1565_p9 = scmp.lt.u32.totalorder %s1561_s19, %s1871_s7 }
  0x18   :  { %p1567_p10 = pnand %p1565_p9, %p1562_p8 }
  0x1a   :  { %1570 = shalt.err (!%p1567_p10)
}
  0x1b   :  { %s1571_s3 = scalar_lea.vmem %s69_s13, 1024  ;;  %p1576_p12 = scmp.lt.s32.totalorder %s69_s13, %s69_s13 }
  0x1c   :  { %p1572_p11 = scmp.ne.s32.totalorder %s69_s13, %s1571_s3  ;;  %p1577_p13 = scmp.lt.s32.totalorder %s1571_s3, %s1571_s3 }
  0x1e   :  { %p1578_p0 = por %p1577_p13, %p1576_p12 }
  0x20   :  { %p1579_p1 = pnand %p1578_p0, %p1572_p11 }
  0x22   :  { %1582 = shalt.err (!%p1579_p1)
}
  0x23   :  { %s1660_s18 = smov 64   ;;  %s1661_s24 = smov 4  }
  0x24   :  { %74 = dma.hbm_to_vmem [thread:$0]  %s1871_s7, 1024, %s69_s13, [#allocation8], %s1660_s18, %s1660_s18, %s1661_s24  }
  0x25   :  { %s1583_s29 = scalar_lea.hbm %s1865_s1, 3072 }
  0x26   :  { %p1584_p2 = scmp.ne.s32.totalorder %s1865_s1, %s1583_s29  ;;  %p1587_p3 = scmp.lt.u32.totalorder %s1583_s29, %s1865_s1 }
  0x28   :  { %p1589_p4 = pnand %p1587_p3, %p1584_p2 }
  0x2a   :  { %1592 = shalt.err (!%p1589_p4)
}
  0x2b   :  { %s1593_s17 = scalar_lea.vmem %s27_s15, 3072  ;;  %p1598_p6 = scmp.lt.s32.totalorder %s27_s15, %s27_s15 }
  0x2c   :  { %p1594_p5 = scmp.ne.s32.totalorder %s27_s15, %s1593_s17  ;;  %p1599_p7 = scmp.lt.s32.totalorder %s1593_s17, %s1593_s17 }
  0x2e   :  { %p1600_p8 = por %p1599_p7, %p1598_p6 }
  0x30   :  { %p1601_p9 = pnand %p1600_p8, %p1594_p5 }
  0x32   :  { %1604 = shalt.err (!%p1601_p9)
}
  0x33   :  { %s1662_s7 = smov 192   ;;  %s1663_s13 = smov 12  }
  0x34   :  { %32 = dma.hbm_to_vmem [thread:$0]  %s1865_s1, 3072, %s27_s15, [#allocation3], %s1662_s7, %s1662_s7, %s1663_s13  }
  0x35   :  { %s1664_s21 = smov [#allocation6]   ;;  %s1665_s23 = smov [#allocation9]  }
  0x36   :  { %s54_s22 = sshll.u32 %s1664_s21, 4  ;;  %s82_s3 = sshll.u32 %s1665_s23, 4  ;;  %s55_s22 = int_to_ptr.vmem [resolvable:$true] %s54_s22  ;;  %s83_s3 = int_to_ptr.vmem [resolvable:$true] %s82_s3 }
  0x37   :  { %s1605_s27 = scalar_lea.hbm %s1869_s5, 2048 }
  0x38   :  { %p1606_p10 = scmp.ne.s32.totalorder %s1869_s5, %s1605_s27  ;;  %p1609_p11 = scmp.lt.u32.totalorder %s1605_s27, %s1869_s5 }
  0x3a   :  { %p1611_p12 = pnand %p1609_p11, %p1606_p10 }
  0x3c   :  { %1614 = shalt.err (!%p1611_p12)
}
  0x3d   :  { %s1615_s1 = scalar_lea.vmem %s55_s22, 2048  ;;  %p1620_p0 = scmp.lt.s32.totalorder %s55_s22, %s55_s22 }
  0x3e   :  { %p1616_p13 = scmp.ne.s32.totalorder %s55_s22, %s1615_s1  ;;  %p1621_p1 = scmp.lt.s32.totalorder %s1615_s1, %s1615_s1 }
  0x40   :  { %p1622_p2 = por %p1621_p1, %p1620_p0 }
  0x42   :  { %p1623_p3 = pnand %p1622_p2, %p1616_p13 }
  0x44   :  { %1626 = shalt.err (!%p1623_p3)
}
  0x45   :  { %60 = dma.hbm_to_vmem [thread:$0]  %s1869_s5, 2048, %s55_s22, [#allocation5], %s1660_s18, %s1660_s18, %s1661_s24  }
  0x46   :  { %s1627_s7 = scalar_lea.hbm %s1873_s9, 1024 }
  0x47   :  { %p1628_p4 = scmp.ne.s32.totalorder %s1873_s9, %s1627_s7  ;;  %p1631_p5 = scmp.lt.u32.totalorder %s1627_s7, %s1873_s9 }
  0x49   :  { %p1633_p6 = pnand %p1631_p5, %p1628_p4 }
  0x4b   :  { %1636 = shalt.err (!%p1633_p6)
}
  0x4c   :  { %s1637_s23 = scalar_lea.vmem %s83_s3, 1024  ;;  %p1642_p8 = scmp.lt.s32.totalorder %s83_s3, %s83_s3 }
  0x4d   :  { %p1638_p7 = scmp.ne.s32.totalorder %s83_s3, %s1637_s23  ;;  %p1643_p9 = scmp.lt.s32.totalorder %s1637_s23, %s1637_s23 }
  0x4f   :  { %p1644_p10 = por %p1643_p9, %p1642_p8 }
  0x51   :  { %p1645_p11 = pnand %p1644_p10, %p1638_p7 }
  0x53   :  { %1648 = shalt.err (!%p1645_p11)
}
  0x54   :  { %88 = dma.hbm_to_vmem [thread:$0]  %s1873_s9, 1024, %s83_s3, [#allocation8], %s1660_s18, %s1660_s18, %s1661_s24  }
  0x55   :  { %1649 = dma.done.wait [#allocation3], 3072  }
  0x56   :  { %1650 = vsyncadd [#allocation3], 4294964224 }
  0x57   :  { %1651 = dma.done.wait [#allocation5], 8192  }
  0x58   :  { %1652 = vsyncadd [#allocation5], 4294959104 }
  0x59   :  { %1653 = dma.done.wait [#allocation8], 2048  }
  0x5a   :  { %1654 = vsyncadd [#allocation8], 4294965248  ;;  %v1666_v0 = vmov 0.0   ;;  %v1667_v1 = vmov 0   ;;  %vm1668_vm0 = vmmov 0   ;;  %v1507_v60 = vld [vmem:[#allocation6 + $0x40] sm:$0xff]  }
  0x5b   :  { %1323 = vmatprep.subr.bf16.mxu1 %v1666_v0  ;;  %317 = vmatprep.mubr.bf16.mxu0 %v1667_v1  ;;  %v1403_v2 = vld [vmem:[#allocation2 + $0x4] ss:$12 sps:$4 sm:$0xff]   ;;  %v1405_v3 = vld [vmem:[#allocation2] ss:$12 sps:$4 sm:$0xff]   ;;  %v1406_v4 = vld [vmem:[#allocation2 + $0x1c] ss:$12 sps:$4 sm:$0xff]  }
  0x5c   :  { %1339 = vmatprep.mubr.msk.bf16.mxu1 %vm1668_vm0, %v1666_v0  ;;  %285 = vmatprep.subr.bf16.mxu0 %v1403_v2  ;;  %v1408_v5 = vld [vmem:[#allocation2 + $0x18] ss:$12 sps:$4 sm:$0xff]   ;;  %v1409_v6 = vld [vmem:[#allocation2 + $0x34] ss:$12 sps:$4 sm:$0xff]   ;;  %v1411_v7 = vld [vmem:[#allocation2 + $0x30] ss:$12 sps:$4 sm:$0xff]  }
  0x5d   :  { %286 = vmatpush1.bf16.msra.mxu0 %v1405_v3  ;;  %v1412_v8 = vld [vmem:[#allocation2 + $0x4c] ss:$12 sps:$4 sm:$0xff]   ;;  %v1414_v9 = vld [vmem:[#allocation2 + $0x48] ss:$12 sps:$4 sm:$0xff]   ;;  %v1415_v11 = vld [vmem:[#allocation2 + $0x64] ss:$12 sps:$4 sm:$0xff]  }
  0x5e   :  { %287 = vmatprep.subr.bf16.mxu0 %v1406_v4  ;;  %v1427_v10 = vld [vmem:[#allocation2 + $0x8] ss:$12 sps:$4 sm:$0xff]   ;;  %v1428_v12 = vld [vmem:[#allocation2 + $0x20] ss:$12 sps:$4 sm:$0xff]   ;;  %v1429_v15 = vld [vmem:[#allocation2 + $0x38] ss:$12 sps:$4 sm:$0xff]  }
  0x5f   :  { %1324 = vmatpush3.bf16.msra.mxu1 %v1427_v10  ;;  %v1417_v13 = vld [vmem:[#allocation2 + $0x60] ss:$12 sps:$4 sm:$0xff]   ;;  %v1418_v14 = vld [vmem:[#allocation2 + $0x7c] ss:$12 sps:$4 sm:$0xff]   ;;  %v1420_v16 = vld [vmem:[#allocation2 + $0x78] ss:$12 sps:$4 sm:$0xff]   ;;  %v142_v10 = vlaneseq }
  0x60   :  { %1325 = vmatprep.subr.bf16.mxu1 %v1666_v0  ;;  %v1421_v17 = vld [vmem:[#allocation2 + $0x94] ss:$12 sps:$4 sm:$0xff]   ;;  %v1430_v18 = vld [vmem:[#allocation2 + $0x50] ss:$12 sps:$4 sm:$0xff]   ;;  %v1424_v20 = vld [vmem:[#allocation2 + $0xac] ss:$12 sps:$4 sm:$0xff]  }
  0x61   :  { %288 = vmatpush1.bf16.msra.mxu0 %v1408_v5  ;;  %v1423_v19 = vld [vmem:[#allocation2 + $0x90] ss:$12 sps:$4 sm:$0xff]   ;;  %v1431_v21 = vld [vmem:[#allocation2 + $0x68] ss:$12 sps:$4 sm:$0xff]   ;;  %v1437_v23 = vld [vmem:[#allocation4 + $0x4] ss:$8 sps:$4 sm:$0xff]  }
  0x62   :  { %289 = vmatprep.subr.bf16.mxu0 %v1409_v6  ;;  %v1426_v22 = vld [vmem:[#allocation2 + $0xa8] ss:$12 sps:$4 sm:$0xff]   ;;  %v1432_v24 = vld [vmem:[#allocation2 + $0x80] ss:$12 sps:$4 sm:$0xff]   ;;  %v1433_v28 = vld [vmem:[#allocation2 + $0x98] ss:$12 sps:$4 sm:$0xff]  }
  0x63   :  { %1326 = vmatpush3.bf16.msra.mxu1 %v1428_v12  ;;  %v107_v25 = vld [vmem:[%s1864_s0] sm:$0xf]  ;;  %v1440_v27 = vld [vmem:[#allocation4 + $0x14] ss:$8 sps:$4 sm:$0xff]   ;;  %v1438_v29 = vld [vmem:[#allocation4 + $0x10] ss:$8 sps:$4 sm:$0xff]  }
  0x64   :  { %1327 = vmatprep.subr.bf16.mxu1 %v1666_v0  ;;  %v1435_v26 = vld [vmem:[#allocation4] ss:$8 sps:$4 sm:$0xff]   ;;  %v1443_v30 = vld [vmem:[#allocation4 + $0x24] ss:$8 sps:$4 sm:$0xff]   ;;  %v1434_v31 = vld [vmem:[#allocation2 + $0xb0] ss:$12 sps:$4 sm:$0xff]  }
  0x65   :  { %290 = vmatpush1.bf16.msra.mxu0 %v1411_v7  ;;  %v1441_v32 = vld [vmem:[#allocation4 + $0x20] ss:$8 sps:$4 sm:$0xff]   ;;  %v1446_v33 = vld [vmem:[#allocation4 + $0x34] ss:$8 sps:$4 sm:$0xff]   ;;  %v1444_v34 = vld [vmem:[#allocation4 + $0x30] ss:$8 sps:$4 sm:$0xff]  }
  0x66   :  { %291 = vmatprep.subr.bf16.mxu0 %v1412_v8  ;;  %v1449_v35 = vld [vmem:[#allocation4 + $0x44] ss:$8 sps:$4 sm:$0xff]   ;;  %v1447_v36 = vld [vmem:[#allocation4 + $0x40] ss:$8 sps:$4 sm:$0xff]   ;;  %v1452_v37 = vld [vmem:[#allocation4 + $0x54] ss:$8 sps:$4 sm:$0xff]  }
  0x67   :  { %1328 = vmatpush3.bf16.msra.mxu1 %v1429_v15  ;;  %v1450_v38 = vld [vmem:[#allocation4 + $0x50] ss:$8 sps:$4 sm:$0xff]   ;;  %v1455_v39 = vld [vmem:[#allocation4 + $0x64] ss:$8 sps:$4 sm:$0xff]   ;;  %v1453_v40 = vld [vmem:[#allocation4 + $0x60] ss:$8 sps:$4 sm:$0xff]  }
  0x68   :  { %1329 = vmatprep.subr.bf16.mxu1 %v1666_v0  ;;  %v1458_v41 = vld [vmem:[#allocation4 + $0x74] ss:$8 sps:$4 sm:$0xff]   ;;  %v1456_v42 = vld [vmem:[#allocation4 + $0x70] ss:$8 sps:$4 sm:$0xff]   ;;  %v1461_v43 = vld [vmem:[#allocation4 + $0x84] ss:$8 sps:$4 sm:$0xff]  }
  0x69   :  { %292 = vmatpush1.bf16.msra.mxu0 %v1414_v9  ;;  %v1459_v44 = vld [vmem:[#allocation4 + $0x80] ss:$8 sps:$4 sm:$0xff]   ;;  %v1464_v45 = vld [vmem:[#allocation4 + $0x94] ss:$8 sps:$4 sm:$0xff]   ;;  %v1462_v46 = vld [vmem:[#allocation4 + $0x90] ss:$8 sps:$4 sm:$0xff]  }
  0x6a   :  { %293 = vmatprep.subr.bf16.mxu0 %v1415_v11  ;;  %v1467_v47 = vld [vmem:[#allocation4 + $0xa4] ss:$8 sps:$4 sm:$0xff]   ;;  %v1465_v48 = vld [vmem:[#allocation4 + $0xa0] ss:$8 sps:$4 sm:$0xff]   ;;  %v1470_v49 = vld [vmem:[#allocation4 + $0xb4] ss:$8 sps:$4 sm:$0xff]  }
  0x6b   :  { %1330 = vmatpush3.bf16.msra.mxu1 %v1430_v18  ;;  %v1468_v50 = vld [vmem:[#allocation4 + $0xb0] ss:$8 sps:$4 sm:$0xff]   ;;  %v1473_v51 = vld [vmem:[#allocation4 + $0xc4] ss:$8 sps:$4 sm:$0xff]   ;;  %v1471_v52 = vld [vmem:[#allocation4 + $0xc0] ss:$8 sps:$4 sm:$0xff]  }
  0x6c   :  { %1331 = vmatprep.subr.bf16.mxu1 %v1666_v0  ;;  %v1476_v53 = vld [vmem:[#allocation4 + $0xd4] ss:$8 sps:$4 sm:$0xff]   ;;  %v1474_v54 = vld [vmem:[#allocation4 + $0xd0] ss:$8 sps:$4 sm:$0xff]   ;;  %v1479_v55 = vld [vmem:[#allocation4 + $0xe4] ss:$8 sps:$4 sm:$0xff]  }
  0x6d   :  { %294 = vmatpush1.bf16.msra.mxu0 %v1417_v13  ;;  %v1477_v56 = vld [vmem:[#allocation4 + $0xe0] ss:$8 sps:$4 sm:$0xff]   ;;  %v1482_v57 = vld [vmem:[#allocation4 + $0xf4] ss:$8 sps:$4 sm:$0xff]   ;;  %v1480_v58 = vld [vmem:[#allocation4 + $0xf0] ss:$8 sps:$4 sm:$0xff]  }
  0x6e   :  { %295 = vmatprep.subr.bf16.mxu0 %v1418_v14  ;;  %v1485_v59 = vld [vmem:[#allocation4 + $0x104] ss:$8 sps:$4 sm:$0xff]   ;;  %v1511_v2 = vld [vmem:[#allocation6 + $0x50] sm:$0xff]   ;;  %v1513_v4 = vld [vmem:[#allocation6 + $0x58] sm:$0xff]   ;;  %v1812_v11 = vshrl.u32 %v142_v10, 7 }
  0x6f   :  { %1332 = vmatpush3.bf16.msra.mxu1 %v1431_v21  ;;  %v1508_v61 = vld [vmem:[#allocation6] sm:$0xff]   ;;  %v1509_v62 = vld [vmem:[#allocation6 + $0x48] sm:$0xff]   ;;  %v1512_v3 = vld [vmem:[#allocation6 + $0x10] sm:$0xff]  }
  0x70   :  { %1333 = vmatprep.subr.bf16.mxu1 %v1666_v0  ;;  %v1510_v63 = vld [vmem:[#allocation6 + $0x8] sm:$0xff]   ;;  %v1514_v5 = vld [vmem:[#allocation6 + $0x18] sm:$0xff]   ;;  %v1515_v6 = vld [vmem:[#allocation6 + $0x60] sm:$0xff]   ;;  %v144_v12 = vsub.s32 0, %v1812_v11  ;;  %v148_v14 = vsub.s32 1, %v1812_v11 }
  0x71   :  { %296 = vmatpush1.bf16.msra.mxu0 %v1420_v16  ;;  %v1516_v7 = vld [vmem:[#allocation6 + $0x20] sm:$0xff]   ;;  %v1517_v8 = vld [vmem:[#allocation6 + $0x68] sm:$0xff]  }
  0x72   :  { %297 = vmatprep.subr.bf16.mxu0 %v1421_v17  ;;  %v1518_v9 = vld [vmem:[#allocation6 + $0x28] sm:$0xff]   ;;  %v140_v13 = vld [vmem:[%s1866_s2] sm:$0x7] }
  0x73   :  { %1334 = vmatpush3.bf16.msra.mxu1 %v1432_v24  ;;  %v145_v15 = vrot.slane %v140_v13, %v144_v12  ;;  %v149_v16 = vrot.slane %v140_v13, %v148_v14  ;;  %v1528_v10 = vld [vmem:[#allocation7 + $0x28] sm:$0xff]  }
  0x74   :  { %1335 = vmatprep.subr.bf16.mxu1 %v1666_v0 }
  0x75   :  { %298 = vmatpush1.bf16.msra.mxu0 %v1423_v19 }
  0x76   :  { %299 = vmatprep.subr.bf16.mxu0 %v1424_v20 }
  0x77   :  { %1336 = vmatpush3.bf16.msra.mxu1 %v1433_v28  ;;  %v1488_v28 = vld [vmem:[#allocation4 + $0x114] ss:$8 sps:$4 sm:$0xff]  }
  0x78   :  { %1337 = vmatprep.subr.bf16.mxu1 %v1666_v0 }
  0x79   :  { %300 = vmatpush1.bf16.msra.mxu0 %v1426_v22 }
  0x7a   :  { %672 = vmatprep.subr.bf16.mxu0 %v1437_v23 }
  0x7b   :  { %1338 = vmatpush3.bf16.msra.mxu1 %v1434_v31  ;;  %v1491_v31 = vld [vmem:[#allocation4 + $0x124] ss:$8 sps:$4 sm:$0xff]  }
  0x7c   :  { %318 = vmatmul.mubr.bf16.vlgmr.msra.gmra.mrb[0].mxu0 %v107_v25  ;;  %1283 = vmatprep.subr.bf16.mxu1 %v1507_v60 }
  0x7d   :  { %673 = vmatpush1.bf16.msra.mxu0 %v1435_v26  ;;  %v1483_v26 = vld [vmem:[#allocation4 + $0x100] ss:$8 sps:$4 sm:$0xff]  }
  0x7e   :  { %674 = vmatprep.subr.bf16.mxu0 %v1440_v27  ;;  %1340 = vmatmul.mubr.bf16.vlgmr.msra.gmra.mrb[0].mxu1 %v107_v25 }
  0x7f   :  { %1284 = vmatpush3.bf16.msra.mxu1 %v1508_v61 }
  0x80   :  { %1285 = vmatprep.subr.bf16.mxu1 %v1509_v62 }
  0x81   :  { %675 = vmatpush1.bf16.msra.mxu0 %v1438_v29  ;;  %v1486_v29 = vld [vmem:[#allocation4 + $0x110] ss:$8 sps:$4 sm:$0xff]  }
  0x82   :  { %676 = vmatprep.subr.bf16.mxu0 %v1443_v30 }
  0x83   :  { %1286 = vmatpush3.bf16.msra.mxu1 %v1510_v63 }
  0x84   :  { %1287 = vmatprep.subr.bf16.mxu1 %v1511_v2 }
  0x85   :  { %677 = vmatpush1.bf16.msra.mxu0 %v1441_v32 }
  0x86   :  { %678 = vmatprep.subr.bf16.mxu0 %v1446_v33 }
  0x87   :  { %1288 = vmatpush3.bf16.msra.mxu1 %v1512_v3 }
  0x88   :  { %1289 = vmatprep.subr.bf16.mxu1 %v1513_v4  ;;  %v1523_v4 = vld [vmem:[#allocation7] sm:$0xff]  }
  0x89   :  { %679 = vmatpush1.bf16.msra.mxu0 %v1444_v34 }
  0x8a   :  { %680 = vmatprep.subr.bf16.mxu0 %v1449_v35  ;;  %v1489_v35 = vld [vmem:[#allocation4 + $0x120] ss:$8 sps:$4 sm:$0xff]  }
  0x8b   :  { %1290 = vmatpush3.bf16.msra.mxu1 %v1514_v5 }
  0x8c   :  { %1291 = vmatprep.subr.bf16.mxu1 %v1515_v6  ;;  %v1524_v6 = vld [vmem:[#allocation7 + $0x8] sm:$0xff]  }
  0x8d   :  { %681 = vmatpush1.bf16.msra.mxu0 %v1447_v36  ;;  %v1494_v36 = vld [vmem:[#allocation4 + $0x134] ss:$8 sps:$4 sm:$0xff]  }
  0x8e   :  { %682 = vmatprep.subr.bf16.mxu0 %v1452_v37  ;;  %v1492_v37 = vld [vmem:[#allocation4 + $0x130] ss:$8 sps:$4 sm:$0xff]  }
  0x8f   :  { %1292 = vmatpush3.bf16.msra.mxu1 %v1516_v7  ;;  %v1525_v7 = vld [vmem:[#allocation7 + $0x10] sm:$0xff]  }
  0x90   :  { %1293 = vmatprep.subr.bf16.mxu1 %v1517_v8  ;;  %v1526_v8 = vld [vmem:[#allocation7 + $0x18] sm:$0xff]  }
  0x91   :  { %683 = vmatpush1.bf16.msra.mxu0 %v1450_v38  ;;  %v1497_v38 = vld [vmem:[#allocation4 + $0x144] ss:$8 sps:$4 sm:$0xff]  }
  0x92   :  { %684 = vmatprep.subr.bf16.mxu0 %v1455_v39  ;;  %v152_v39 = vsub.s32 2, %v1812_v11  ;;  %v1529_v11 = vld [vmem:[#allocation7 + $0x30] sm:$0xff]  }
  0x93   :  { %1294 = vmatpush3.bf16.msra.mxu1 %v1518_v9  ;;  %v1527_v9 = vld [vmem:[#allocation7 + $0x20] sm:$0xff]  }
  0x95   :  { %685 = vmatpush1.bf16.msra.mxu0 %v1453_v40  ;;  %v1495_v40 = vld [vmem:[#allocation4 + $0x140] ss:$8 sps:$4 sm:$0xff]  }
  0x96   :  { %686 = vmatprep.subr.bf16.mxu0 %v1458_v41  ;;  %v1500_v41 = vld [vmem:[#allocation4 + $0x154] ss:$8 sps:$4 sm:$0xff]  }
  0x99   :  { %687 = vmatpush1.bf16.msra.mxu0 %v1456_v42  ;;  %v1498_v42 = vld [vmem:[#allocation4 + $0x150] ss:$8 sps:$4 sm:$0xff]  }
  0x9a   :  { %688 = vmatprep.subr.bf16.mxu0 %v1461_v43  ;;  %v1503_v43 = vld [vmem:[#allocation4 + $0x164] ss:$8 sps:$4 sm:$0xff]  }
  0x9d   :  { %689 = vmatpush1.bf16.msra.mxu0 %v1459_v44 }
  0x9e   :  { %690 = vmatprep.subr.bf16.mxu0 %v1464_v45  ;;  %v1501_v45 = vld [vmem:[#allocation4 + $0x160] ss:$8 sps:$4 sm:$0xff]  }
  0xa1   :  { %691 = vmatpush1.bf16.msra.mxu0 %v1462_v46  ;;  %v1506_v46 = vld [vmem:[#allocation4 + $0x174] ss:$8 sps:$4 sm:$0xff]  }
  0xa2   :  { %692 = vmatprep.subr.bf16.mxu0 %v1467_v47 }
  0xa5   :  { %693 = vmatpush1.bf16.msra.mxu0 %v1465_v48  ;;  %v1504_v48 = vld [vmem:[#allocation4 + $0x170] ss:$8 sps:$4 sm:$0xff]  }
  0xa6   :  { %694 = vmatprep.subr.bf16.mxu0 %v1470_v49 }
  0xa9   :  { %695 = vmatpush1.bf16.msra.mxu0 %v1468_v50  ;;  %v1519_v50 = vld [vmem:[#allocation6 + $0x70] sm:$0xff]  }
  0xaa   :  { %696 = vmatprep.subr.bf16.mxu0 %v1473_v51  ;;  %v1520_v51 = vld [vmem:[#allocation6 + $0x30] sm:$0xff]   ;;  %1295 = vmatprep.subr.bf16.mxu1 %v1519_v50 }
  0xab   :  { %1296 = vmatpush3.bf16.msra.mxu1 %v1520_v51 }
  0xad   :  { %697 = vmatpush1.bf16.msra.mxu0 %v1471_v52  ;;  %v1521_v52 = vld [vmem:[#allocation6 + $0x78] sm:$0xff]  }
  0xae   :  { %698 = vmatprep.subr.bf16.mxu0 %v1476_v53  ;;  %v1522_v53 = vld [vmem:[#allocation6 + $0x38] sm:$0xff]   ;;  %1297 = vmatprep.subr.bf16.mxu1 %v1521_v52 }
  0xaf   :  { %1298 = vmatpush3.bf16.msra.mxu1 %v1522_v53 }
  0xb0   :  { %1343 = vmatprep.subr.bf16.mxu1 %v1666_v0 }
  0xb1   :  { %699 = vmatpush1.bf16.msra.mxu0 %v1474_v54  ;;  %v420_v54 = vld [vmem:[%s1868_s4] sm:$0x3] }
  0xb2   :  { %700 = vmatprep.subr.bf16.mxu0 %v1479_v55  ;;  %v425_v55 = vrot.slane %v420_v54, %v144_v12  ;;  %v1530_v12 = vld [vmem:[#allocation7 + $0x38] sm:$0xff]  }
  0xb5   :  { %701 = vmatpush1.bf16.msra.mxu0 %v1477_v56  ;;  %v429_v56 = vrot.slane %v420_v54, %v148_v14  ;;  %v1239_v14 = vld [vmem:[%s1870_s6] ss:$0 sm:$0xff] }
  0xb6   :  { %702 = vmatprep.subr.bf16.mxu0 %v1482_v57 }
  0xb9   :  { %703 = vmatpush1.bf16.msra.mxu0 %v1480_v58 }
  0xba   :  { %713 = vmatprep.subr.bf16.mxu0 %v1485_v59 }
 0x14f   :  { %v319_v17 = vpop.f32.mrb[0].mxu0 }
 0x150   :  { %v320_v18 = vadd.f32 %v319_v17, %v145_v15  ;;  %v321_v19 = vpop.f32.mrb[1].mxu0 }
 0x151   :  { %v322_v20 = vadd.f32 %v321_v19, %v149_v16  ;;  %v323_v21 = vpop.f32.mrb[2].mxu0  ;;  %v360_v30 = vpop.f32.mrb[0].mxu1 }
 0x152   :  { %v366_v22 = vmax.f32 %v320_v18, 0.0  ;;  %v324_v23 = vpop.f32.mrb[3].mxu0  ;;  %v1341_v32 = vpop.f32.mrb[1].mxu1  ;;  %v1531_v21 = vld [vmem:[#allocation9] sm:$0xff]  }
 0x153   :  { %v367_v24 = vmax.f32 %v322_v20, 0.0  ;;  %v363_v33 = vpop.f32.mrb[2].mxu1  ;;  %v1532_v23 = vld [vmem:[#allocation9 + $0x8] sm:$0xff]  }
 0x154   :  { %v369_v27 = vpack.c.bf16 %v366_v22, %v366_v22  ;;  %v1342_v34 = vpop.f32.mrb[3].mxu1 }
 0x155   :  { %v370_v25 = vpack.c.bf16 %v367_v24, %v367_v24  ;;  %v1533_v24 = vld [vmem:[#allocation9 + $0x10] sm:$0xff]  }
 0x157   :  { %704 = vmatprep.mubr.bf16.mxu0 %v370_v25  ;;  %v1534_v25 = vld [vmem:[#allocation9 + $0x18] sm:$0xff]  }
 0x158   :  { %705 = vmatmul.mubr.bf16.vlgmr.msra.gmra.mrb[4].mxu0 %v369_v27  ;;  %v1536_v27 = vld [vmem:[#allocation9 + $0x28] sm:$0xff]  }
 0x159   :  { %714 = vmatpush1.bf16.msra.mxu0 %v1483_v26  ;;  %745 = vmatprep.mubr.bf16.mxu0 %v1667_v1  ;;  %v153_v1 = vrot.slane %v140_v13, %v152_v39  ;;  %v1535_v26 = vld [vmem:[#allocation9 + $0x20] sm:$0xff]  }
 0x15a   :  { %715 = vmatprep.subr.bf16.mxu0 %v1488_v28  ;;  %v1537_v28 = vld [vmem:[#allocation9 + $0x30] sm:$0xff]  }
 0x15b   :  { %v361_v44 = vadd.f32 %v360_v30, %v153_v1  ;;  %v1256_v30 = vld [vmem:[%s1872_s8] ss:$0 sm:$0xff] }
 0x15d   :  { %716 = vmatpush1.bf16.msra.mxu0 %v1486_v29  ;;  %v368_v47 = vmax.f32 %v361_v44, 0.0  ;;  %v1538_v29 = vld [vmem:[#allocation9 + $0x38] sm:$0xff]  }
 0x15e   :  { %717 = vmatprep.subr.bf16.mxu0 %v1491_v31 }
 0x15f   :  { %v371_v49 = vpack.c.bf16 %v368_v47, %v368_v47 }
 0x161   :  { %718 = vmatpush1.bf16.msra.mxu0 %v1489_v35 }
 0x162   :  { %719 = vmatprep.subr.bf16.mxu0 %v1494_v36 }
 0x165   :  { %720 = vmatpush1.bf16.msra.mxu0 %v1492_v37 }
 0x166   :  { %721 = vmatprep.subr.bf16.mxu0 %v1497_v38  ;;  %v1265_v38 = vld [vmem:[%s1874_s10] ss:$0 sm:$0xff] }
 0x169   :  { %722 = vmatpush1.bf16.msra.mxu0 %v1495_v40 }
 0x16a   :  { %723 = vmatprep.subr.bf16.mxu0 %v1500_v41 }
 0x16d   :  { %724 = vmatpush1.bf16.msra.mxu0 %v1498_v42 }
 0x16e   :  { %725 = vmatprep.subr.bf16.mxu0 %v1503_v43 }
 0x171   :  { %726 = vmatpush1.bf16.msra.mxu0 %v1501_v45 }
 0x172   :  { %727 = vmatprep.subr.bf16.mxu0 %v1506_v46 }
 0x175   :  { %728 = vmatpush1.bf16.msra.mxu0 %v1504_v48 }
 0x178   :  { %746 = vmatmul.mubr.bf16.vlgmr.msra.gmra.mrb[4].mxu0 %v371_v49 }
 0x24b   :  { %v747_v57 = vpop.f32.mrb[4].mxu0 }
 0x24c   :  { %v1383_v58 = vadd.f32 %v747_v57, %v425_v55  ;;  %v749_v59 = vpop.f32.mrb[5].mxu0 }
 0x24d   :  { %v1384_v60 = vadd.f32 %v749_v59, %v429_v56  ;;  %v751_v61 = vpop.f32.mrb[6].mxu0 }
 0x24e   :  { %v754_v62 = vmax.f32 %v1383_v58, 0.0  ;;  %v752_v63 = vpop.f32.mrb[7].mxu0 }
 0x24f   :  { %v755_v2 = vmax.f32 %v1384_v60, 0.0 }
 0x250   :  { %v756_v5 = vpack.c.bf16 %v754_v62, %v754_v62 }
 0x251   :  { %v757_v3 = vpack.c.bf16 %v755_v2, %v755_v2 }
 0x253   :  { %925 = vmatprep.mubr.bf16.mxu1 %v757_v3 }
 0x254   :  { %926 = vmatmul.mubr.bf16.vlgmr.msra.gmra.mrb[4].mxu1 %v756_v5 }
 0x255   :  { %1344 = vmatpush3.bf16.msra.mxu1 %v1523_v4  ;;  %1359 = vmatprep.mubr.msk.bf16.mxu1 %vm1668_vm0, %v1666_v0 }
 0x256   :  { %1345 = vmatprep.subr.bf16.mxu1 %v1666_v0 }
 0x259   :  { %1346 = vmatpush3.bf16.msra.mxu1 %v1524_v6 }
 0x25a   :  { %1347 = vmatprep.subr.bf16.mxu1 %v1666_v0 }
 0x25d   :  { %1348 = vmatpush3.bf16.msra.mxu1 %v1525_v7 }
 0x25e   :  { %1349 = vmatprep.subr.bf16.mxu1 %v1666_v0 }
 0x261   :  { %1350 = vmatpush3.bf16.msra.mxu1 %v1526_v8 }
 0x262   :  { %1351 = vmatprep.subr.bf16.mxu1 %v1666_v0 }
 0x265   :  { %1352 = vmatpush3.bf16.msra.mxu1 %v1527_v9 }
 0x266   :  { %1353 = vmatprep.subr.bf16.mxu1 %v1666_v0 }
 0x269   :  { %1354 = vmatpush3.bf16.msra.mxu1 %v1528_v10 }
 0x26a   :  { %1355 = vmatprep.subr.bf16.mxu1 %v1666_v0 }
 0x26d   :  { %1356 = vmatpush3.bf16.msra.mxu1 %v1529_v11 }
 0x26e   :  { %1357 = vmatprep.subr.bf16.mxu1 %v1666_v0 }
 0x271   :  { %1358 = vmatpush3.bf16.msra.mxu1 %v1530_v12 }
 0x272   :  { %1363 = vmatprep.subr.bf16.mxu1 %v1666_v0 }
 0x327   :  { %v1299_v13 = vpop.f32.mrb[4].mxu1 }
 0x328   :  { %v1300_v15 = vpop.f32.mrb[5].mxu1 }
 0x329   :  { %v1301_v16 = vadd.f32 %v1300_v15, %v1299_v13  ;;  %v1302_v17 = vpop.f32.mrb[6].mxu1 }
 0x32a   :  { %v1303_v18 = vpop.f32.mrb[7].mxu1 }
 0x32b   :  { %v928_v19 = vadd.f32 %v1301_v16, %v1239_v14 }
 0x32d   :  { %v933_v20 = vmax.f32 %v928_v19, 0.0 }
 0x32f   :  { %v934_v22 = vpack.c.bf16 %v933_v20, %v933_v20 }
 0x331   :  { %1360 = vmatmul.mubr.bf16.vlgmr.msra.gmra.mrb[8].mxu1 %v934_v22 }
 0x332   :  { %1364 = vmatpush3.bf16.msra.mxu1 %v1531_v21  ;;  %1379 = vmatprep.mubr.msk.bf16.mxu1 %vm1668_vm0, %v1666_v0 }
 0x333   :  { %1365 = vmatprep.subr.bf16.mxu1 %v1666_v0 }
 0x336   :  { %1366 = vmatpush3.bf16.msra.mxu1 %v1532_v23 }
 0x337   :  { %1367 = vmatprep.subr.bf16.mxu1 %v1666_v0 }
 0x33a   :  { %1368 = vmatpush3.bf16.msra.mxu1 %v1533_v24 }
 0x33b   :  { %1369 = vmatprep.subr.bf16.mxu1 %v1666_v0 }
 0x33e   :  { %1370 = vmatpush3.bf16.msra.mxu1 %v1534_v25 }
 0x33f   :  { %1371 = vmatprep.subr.bf16.mxu1 %v1666_v0 }
 0x342   :  { %1372 = vmatpush3.bf16.msra.mxu1 %v1535_v26 }
 0x343   :  { %1373 = vmatprep.subr.bf16.mxu1 %v1666_v0 }
 0x346   :  { %1374 = vmatpush3.bf16.msra.mxu1 %v1536_v27 }
 0x347   :  { %1375 = vmatprep.subr.bf16.mxu1 %v1666_v0 }
 0x34a   :  { %1376 = vmatpush3.bf16.msra.mxu1 %v1537_v28 }
 0x34b   :  { %1377 = vmatprep.subr.bf16.mxu1 %v1666_v0 }
 0x34e   :  { %1378 = vmatpush3.bf16.msra.mxu1 %v1538_v29 }
 0x404   :  { %v1040_v31 = vpop.f32.mrb[8].mxu1 }
 0x405   :  { %v1041_v32 = vadd.f32 %v1256_v30, %v1040_v31  ;;  %v1361_v33 = vpop.f32.mrb[9].mxu1 }
 0x406   :  { %v1043_v34 = vpop.f32.mrb[10].mxu1 }
 0x407   :  { %v1046_v35 = vmax.f32 %v1041_v32, 0.0  ;;  %v1362_v36 = vpop.f32.mrb[11].mxu1 }
 0x409   :  { %v1047_v37 = vpack.c.bf16 %v1046_v35, %v1046_v35 }
 0x40b   :  { %1380 = vmatmul.mubr.bf16.vlgmr.msra.gmra.mrb[12].mxu1 %v1047_v37 }
 0x4de   :  { %v1153_v39 = vpop.f32.mrb[12].mxu1 }
 0x4df   :  { %v1154_v0 = vadd.f32 %v1265_v38, %v1153_v39  ;;  %v1381_v40 = vpop.f32.mrb[13].mxu1 }
 0x4e0   :  { %v1156_v41 = vpop.f32.mrb[14].mxu1 }
 0x4e1   :  { %1159 = vst [vmem:[%s1875_s11] sm:$0xff] %v1154_v0  ;;  %v1382_v1 = vpop.f32.mrb[15].mxu1 }
 0x4e2   :  { %1164 = vsyncpa [#allocation3], 1 }
 0x4e3   :  { %1165 = vsyncpa [#allocation5], 1 }
 0x4e4   :  { %1166 = vsyncpa [#allocation8], 1 }

</bundles_post_ra>
